<compile_context>
chip_gen: v7x
topology: tpu7x:2x2x1
jax: 0.10.0
libtpu: 0.0.40
codegen_flags: <defaults>
</compile_context>

<pallas_src>
import functools

import jax
import jax.numpy as jnp
from jax.experimental import pallas as pl
from jax.experimental.pallas import tpu as pltpu


def _focal_loss_kernel(x_ref, t_ref, out_ref, acc_ref, *, alpha, gamma,
                       ignore_index, unroll_classes):
    n = pl.program_id(0)
    j = pl.program_id(1)
    is_first = jnp.logical_and(n == 0, j == 0)
    is_last = jnp.logical_and(n == pl.num_programs(0) - 1,
                              j == pl.num_programs(1) - 1)

    @pl.when(is_first)
    def _():
        acc_ref[...] = jnp.zeros_like(acc_ref)

    x = x_ref[0].astype(jnp.float32)   # (C, tile)  classes on sublanes
    t = t_ref[0]                       # (1, tile)  int32 targets, lane-dense
    C = x.shape[0]

    if unroll_classes:
        # Unrolled class reduction: pure VPU ops on lane-dense (1, tile) rows.
        m = x[0:1, :]
        for c in range(1, C):
            m = jnp.maximum(m, x[c:c + 1, :])
        s = jnp.zeros_like(m)
        x_t = jnp.zeros_like(m)
        for c in range(C):
            xc = x[c:c + 1, :]
            s = s + jnp.exp(xc - m)
            x_t = x_t + jnp.where(t == c, xc, 0.0)
    else:
        # Fallback for large C: sublane reductions.
        m = jnp.max(x, axis=0, keepdims=True)                       # (1, tile)
        s = jnp.sum(jnp.exp(x - m), axis=0, keepdims=True)          # (1, tile)
        col = jax.lax.broadcasted_iota(jnp.int32, x.shape, 0)       # (C, tile)
        x_t = jnp.sum(jnp.where(col == t, x, 0.0), axis=0, keepdims=True)

    lse = m + jnp.log(s)                                            # (1, tile)
    valid = t != ignore_index
    # Clamp ce >= 0 so a tiny negative rounding error can't NaN (1-pt)**gamma.
    ce = jnp.where(valid, jnp.maximum(lse - x_t, 0.0), 0.0)         # (1, tile)

    if gamma == 0.0:
        focal = alpha * ce
    else:
        pt = jnp.exp(-ce)
        one_m_pt = 1.0 - pt
        if float(gamma).is_integer() and 1 <= int(gamma) <= 4:
            w = one_m_pt
            for _ in range(int(gamma) - 1):
                w = w * one_m_pt
        else:
            w = one_m_pt ** gamma
        focal = alpha * w * ce

    acc_ref[...] += focal

    @pl.when(is_last)
    def _():
        out_ref[...] = jnp.sum(acc_ref[...], axis=1, keepdims=True)   # (1, 1)


def focal_loss1(logits_nchw, targets_nhw, *, alpha=1.0, gamma=0.0,
                size_average=True, ignore_index=255,
                max_block_bytes=2 * 1024 * 1024):
    """JAX/Pallas equivalent of FocalLoss1.forward(inputs, targets)."""
    N, C, H, W = logits_nchw.shape
    HW = H * W
    P = N * HW

    # Free reshapes: NCHW is already (N, C, HW)-contiguous; pixels end up on
    # the lane axis, classes on the sublane axis. No transpose in HBM.
    x = logits_nchw.reshape(N, C, HW)
    t = targets_nhw.reshape(N, 1, HW).astype(jnp.int32)

    lane = 128
    itemsize = jnp.dtype(x.dtype).itemsize
    # Pixels per tile: multiple of 128, logits block capped at ~max_block_bytes.
    max_pix = max(lane, (max_block_bytes // (C * itemsize)) // lane * lane)
    tile = min(max_pix, pl.cdiv(HW, lane) * lane)
    hw_pad = pl.cdiv(HW, tile) * tile
    if hw_pad != HW:
        x = jnp.pad(x, ((0, 0), (0, 0), (0, hw_pad - HW)))
        t = jnp.pad(t, ((0, 0), (0, 0), (0, hw_pad - HW)),
                    constant_values=ignore_index)

    kernel = functools.partial(
        _focal_loss_kernel,
        alpha=float(alpha), gamma=float(gamma), ignore_index=int(ignore_index),
        unroll_classes=(C <= 32),
    )

    total = pl.pallas_call(
        kernel,
        out_shape=jax.ShapeDtypeStruct((1, 1), jnp.float32),
        grid_spec=pltpu.PrefetchScalarGridSpec(
            num_scalar_prefetch=0,
            grid=(N, hw_pad // tile),
            in_specs=[
                pl.BlockSpec((1, C, tile), lambda n, j: (n, 0, j)),
                pl.BlockSpec((1, 1, tile), lambda n, j: (n, 0, j)),
            ],
            out_specs=pl.BlockSpec((1, 1), lambda n, j: (0, 0)),
            scratch_shapes=[pltpu.VMEM((1, tile), jnp.float32)],
        ),
        compiler_params=pltpu.CompilerParams(
            dimension_semantics=("arbitrary", "arbitrary"),
            vmem_limit_bytes=32 * 1024 * 1024,
        ),
    )(x, t)[0, 0]

    if size_average:
        # .mean() of the reduction='none' tensor divides by ALL pixels,
        # including the ignored ones (PyTorch semantics reproduced here).
        return total / jnp.float32(P)
    return total


def _reference(logits_nchw, targets_nhw, *, alpha=1.0, gamma=0.0,
               size_average=True, ignore_index=255):
    """Pure-JAX reference for correctness checking."""
    N, C, H, W = logits_nchw.shape
    x = jnp.transpose(logits_nchw, (0, 2, 3, 1)).reshape(-1, C).astype(jnp.float32)
    t = targets_nhw.reshape(-1).astype(jnp.int32)
    lse = jax.scipy.special.logsumexp(x, axis=-1)
    safe_t = jnp.where(t == ignore_index, 0, t)
    x_t = jnp.take_along_axis(x, safe_t[:, None], axis=-1)[:, 0]
    ce = jnp.where(t == ignore_index, 0.0, lse - x_t)
    pt = jnp.exp(-ce)
    focal = alpha * (1.0 - pt) ** gamma * ce
    return focal.mean() if size_average else focal.sum()


if __name__ == "__main__":
    key = jax.random.PRNGKey(0)
    k1, k2, k3 = jax.random.split(key, 3)

    N, C, H, W = 2, 4, 16, 16
    logits = jax.random.normal(k1, (N, C, H, W), dtype=jnp.float32)
    targets = jax.random.randint(k2, (N, H, W), 0, C, dtype=jnp.int32)
    # sprinkle in some ignore_index pixels
    ignore_mask = jax.random.bernoulli(k3, 0.1, (N, H, W))
    targets = jnp.where(ignore_mask, 255, targets)

    loss = focal_loss1(logits, targets, alpha=1.0, gamma=0.0,
                       size_average=True, ignore_index=255)
    loss = jax.block_until_ready(loss)

    ref = _reference(logits, targets, alpha=1.0, gamma=0.0,
                     size_average=True, ignore_index=255)
    assert jnp.allclose(loss, ref, rtol=1e-5, atol=1e-5), (loss, ref)

    print("KERNEL_OK")
</pallas_src>

<mosaic_0001>
module attributes {stable_mosaic.version = 11 : i64} {
  func.func @_focal_loss_kernel(%arg0: i32, %arg1: i32, %arg2: memref<1x4x256xf32, #tpu.memory_space<vmem>>, %arg3: memref<1x1x256xi32, #tpu.memory_space<vmem>>, %arg4: memref<1x1xf32, #tpu.memory_space<vmem>>, %arg5: memref<1x256xf32, #tpu.memory_space<vmem>>) attributes {dimension_semantics = [#tpu.dimension_semantics<arbitrary>, #tpu.dimension_semantics<arbitrary>], iteration_bounds = array<i64: 2, 1>, scalar_prefetch = 0 : i64, scratch_operands = 1 : i64, tpu.core_type = #tpu.core_type<tc>, window_params = [{transform_indices = @transform_0, window_bounds = array<i64: 1, 4, 256>}, {transform_indices = @transform_1, window_bounds = array<i64: 1, 1, 256>}, {pipeline_mode = #tpu.pipeline_mode<synchronous>, transform_indices = @transform_2, window_bounds = array<i64: 1, 1>}]} {
    %c0_i32 = arith.constant 0 : i32
    %0 = arith.cmpi eq, %arg0, %c0_i32 : i32
    %c0_i32_0 = arith.constant 0 : i32
    %1 = arith.cmpi eq, %arg1, %c0_i32_0 : i32
    %2 = arith.andi %0, %1 : i1
    %c1_i32 = arith.constant 1 : i32
    %3 = arith.cmpi eq, %arg0, %c1_i32 : i32
    %c0_i32_1 = arith.constant 0 : i32
    %4 = arith.cmpi eq, %arg1, %c0_i32_1 : i32
    %5 = arith.andi %3, %4 : i1
    %6 = arith.extui %2 : i1 to i32
    %c0_i32_2 = arith.constant 0 : i32
    %7 = arith.cmpi ne, %6, %c0_i32_2 : i32
    scf.if %7 {
      %cst_23 = arith.constant 0.000000e+00 : f32
      %73 = vector.broadcast %cst_23 : f32 to vector<1x256xf32>
      %c0_24 = arith.constant 0 : index
      %c0_25 = arith.constant 0 : index
      %74 = vector.load %arg5[%c0_24, %c0_25] : memref<1x256xf32, #tpu.memory_space<vmem>>, vector<1x256xf32>
      tpu.vector_store %arg5[%c0_24, %c0_25], %73 {strides = array<i32>} : memref<1x256xf32, #tpu.memory_space<vmem>>, vector<1x256xf32>,
    } else {
    }
    %c0 = arith.constant 0 : index
    %c0_3 = arith.constant 0 : index
    %c0_4 = arith.constant 0 : index
    %8 = vector.load %arg2[%c0, %c0_3, %c0_4] : memref<1x4x256xf32, #tpu.memory_space<vmem>>, vector<1x4x256xf32>
    %9 = vector.shape_cast %8 : vector<1x4x256xf32> to vector<4x256xf32>
    %c0_5 = arith.constant 0 : index
    %c0_6 = arith.constant 0 : index
    %c0_7 = arith.constant 0 : index
    %10 = vector.load %arg3[%c0_5, %c0_6, %c0_7] : memref<1x1x256xi32, #tpu.memory_space<vmem>>, vector<1x1x256xi32>
    %11 = vector.shape_cast %10 : vector<1x1x256xi32> to vector<1x256xi32>
    %12 = vector.extract_strided_slice %9 {offsets = [0, 0], sizes = [1, 256], strides = [1, 1]} : vector<4x256xf32> to vector<1x256xf32>
    %13 = vector.extract_strided_slice %9 {offsets = [1, 0], sizes = [1, 256], strides = [1, 1]} : vector<4x256xf32> to vector<1x256xf32>
    %14 = arith.maximumf %12, %13 : vector<1x256xf32>
    %15 = vector.extract_strided_slice %9 {offsets = [2, 0], sizes = [1, 256], strides = [1, 1]} : vector<4x256xf32> to vector<1x256xf32>
    %16 = arith.maximumf %14, %15 : vector<1x256xf32>
    %17 = vector.extract_strided_slice %9 {offsets = [3, 0], sizes = [1, 256], strides = [1, 1]} : vector<4x256xf32> to vector<1x256xf32>
    %18 = arith.maximumf %16, %17 : vector<1x256xf32>
    %cst = arith.constant 0.000000e+00 : f32
    %19 = vector.broadcast %cst : f32 to vector<1x256xf32>
    %cst_8 = arith.constant 0.000000e+00 : f32
    %20 = vector.broadcast %cst_8 : f32 to vector<1x256xf32>
    %21 = vector.extract_strided_slice %9 {offsets = [0, 0], sizes = [1, 256], strides = [1, 1]} : vector<4x256xf32> to vector<1x256xf32>
    %22 = arith.subf %21, %18 : vector<1x256xf32>
    %23 = math.exp %22 : vector<1x256xf32>
    %24 = arith.addf %19, %23 : vector<1x256xf32>
    %c0_i32_9 = arith.constant 0 : i32
    %25 = vector.broadcast %c0_i32_9 : i32 to vector<1x256xi32>
    %26 = arith.cmpi eq, %11, %25 : vector<1x256xi32>
    %cst_10 = arith.constant 0.000000e+00 : f32
    %27 = vector.broadcast %cst_10 : f32 to vector<1x256xf32>
    %28 = arith.select %26, %21, %27 : vector<1x256xi1>, vector<1x256xf32>
    %29 = arith.addf %20, %28 : vector<1x256xf32>
    %30 = vector.extract_strided_slice %9 {offsets = [1, 0], sizes = [1, 256], strides = [1, 1]} : vector<4x256xf32> to vector<1x256xf32>
    %31 = arith.subf %30, %18 : vector<1x256xf32>
    %32 = math.exp %31 : vector<1x256xf32>
    %33 = arith.addf %24, %32 : vector<1x256xf32>
    %c1_i32_11 = arith.constant 1 : i32
    %34 = vector.broadcast %c1_i32_11 : i32 to vector<1x256xi32>
    %35 = arith.cmpi eq, %11, %34 : vector<1x256xi32>
    %cst_12 = arith.constant 0.000000e+00 : f32
    %36 = vector.broadcast %cst_12 : f32 to vector<1x256xf32>
    %37 = arith.select %35, %30, %36 : vector<1x256xi1>, vector<1x256xf32>
    %38 = arith.addf %29, %37 : vector<1x256xf32>
    %39 = vector.extract_strided_slice %9 {offsets = [2, 0], sizes = [1, 256], strides = [1, 1]} : vector<4x256xf32> to vector<1x256xf32>
    %40 = arith.subf %39, %18 : vector<1x256xf32>
    %41 = math.exp %40 : vector<1x256xf32>
    %42 = arith.addf %33, %41 : vector<1x256xf32>
    %c2_i32 = arith.constant 2 : i32
    %43 = vector.broadcast %c2_i32 : i32 to vector<1x256xi32>
    %44 = arith.cmpi eq, %11, %43 : vector<1x256xi32>
    %cst_13 = arith.constant 0.000000e+00 : f32
    %45 = vector.broadcast %cst_13 : f32 to vector<1x256xf32>
    %46 = arith.select %44, %39, %45 : vector<1x256xi1>, vector<1x256xf32>
    %47 = arith.addf %38, %46 : vector<1x256xf32>
    %48 = vector.extract_strided_slice %9 {offsets = [3, 0], sizes = [1, 256], strides = [1, 1]} : vector<4x256xf32> to vector<1x256xf32>
    %49 = arith.subf %48, %18 : vector<1x256xf32>
    %50 = math.exp %49 : vector<1x256xf32>
    %51 = arith.addf %42, %50 : vector<1x256xf32>
    %c3_i32 = arith.constant 3 : i32
    %52 = vector.broadcast %c3_i32 : i32 to vector<1x256xi32>
    %53 = arith.cmpi eq, %11, %52 : vector<1x256xi32>
    %cst_14 = arith.constant 0.000000e+00 : f32
    %54 = vector.broadcast %cst_14 : f32 to vector<1x256xf32>
    %55 = arith.select %53, %48, %54 : vector<1x256xi1>, vector<1x256xf32>
    %56 = arith.addf %47, %55 : vector<1x256xf32>
    %57 = math.log %51 : vector<1x256xf32>
    %58 = arith.addf %18, %57 : vector<1x256xf32>
    %c255_i32 = arith.constant 255 : i32
    %59 = vector.broadcast %c255_i32 : i32 to vector<1x256xi32>
    %60 = arith.cmpi ne, %11, %59 : vector<1x256xi32>
    %61 = arith.subf %58, %56 : vector<1x256xf32>
    %cst_15 = arith.constant 0.000000e+00 : f32
    %62 = vector.broadcast %cst_15 : f32 to vector<1x256xf32>
    %63 = arith.maximumf %61, %62 : vector<1x256xf32>
    %cst_16 = arith.constant 0.000000e+00 : f32
    %64 = vector.broadcast %cst_16 : f32 to vector<1x256xf32>
    %65 = arith.select %60, %63, %64 : vector<1x256xi1>, vector<1x256xf32>
    %cst_17 = arith.constant 1.000000e+00 : f32
    %66 = vector.broadcast %cst_17 : f32 to vector<1x256xf32>
    %67 = arith.mulf %66, %65 : vector<1x256xf32>
    %c0_18 = arith.constant 0 : index
    %c0_19 = arith.constant 0 : index
    %68 = vector.load %arg5[%c0_18, %c0_19] : memref<1x256xf32, #tpu.memory_space<vmem>>, vector<1x256xf32>
    %69 = arith.addf %68, %67 : vector<1x256xf32>
    %c0_20 = arith.constant 0 : index
    %c0_21 = arith.constant 0 : index
    %70 = vector.load %arg5[%c0_20, %c0_21] : memref<1x256xf32, #tpu.memory_space<vmem>>, vector<1x256xf32>
    tpu.vector_store %arg5[%c0_20, %c0_21], %69 {strides = array<i32>} : memref<1x256xf32, #tpu.memory_space<vmem>>, vector<1x256xf32>,
    %71 = arith.extui %5 : i1 to i32
    %c0_i32_22 = arith.constant 0 : i32
    %72 = arith.cmpi ne, %71, %c0_i32_22 : i32
    scf.if %72 {
      %c0_23 = arith.constant 0 : index
      %c0_24 = arith.constant 0 : index
      %73 = vector.load %arg5[%c0_23, %c0_24] : memref<1x256xf32, #tpu.memory_space<vmem>>, vector<1x256xf32>
      %cst_25 = arith.constant dense<0.000000e+00> : vector<1xf32>
      %74 = vector.multi_reduction <add>, %73, %cst_25 [1] : vector<1x256xf32> to vector<1xf32>
      %75 = vector.shape_cast %74 : vector<1xf32> to vector<1x1xf32>
      %c0_26 = arith.constant 0 : index
      %c0_27 = arith.constant 0 : index
      %76 = vector.load %arg4[%c0_26, %c0_27] : memref<1x1xf32, #tpu.memory_space<vmem>>, vector<1x1xf32>
      tpu.vector_store %arg4[%c0_26, %c0_27], %75 {strides = array<i32>} : memref<1x1xf32, #tpu.memory_space<vmem>>, vector<1x1xf32>,
    } else {
    }
    return
  }
  func.func @transform_0(%arg0: i32, %arg1: i32) -> (i32, i32, i32) {
    %c0_i32 = arith.constant 0 : i32
    %c0_i32_0 = arith.constant 0 : i32
    return %arg0, %c0_i32, %arg1 : i32, i32, i32
  }
  func.func @transform_1(%arg0: i32, %arg1: i32) -> (i32, i32, i32) {
    %c0_i32 = arith.constant 0 : i32
    %c0_i32_0 = arith.constant 0 : i32
    return %arg0, %c0_i32, %arg1 : i32, i32, i32
  }
  func.func @transform_2(%arg0: i32, %arg1: i32) -> (i32, i32) {
    %c0_i32 = arith.constant 0 : i32
    %c0_i32_0 = arith.constant 0 : i32
    %c0_i32_1 = arith.constant 0 : i32
    return %c0_i32, %c0_i32_0 : i32, i32
  }
}

</mosaic_0001>

<bundles_post_ra>
// kernel: tpu_custom_call.1
= control target key start
LH: loop header
LB: loop body
LE: loop exit
PB: predicated region body
PF: predicated region fallthrough
CT: control target
= control target key end

     0   :  { %7 = vsyncpa [#allocation4], 0  ;;  %s949_s0 = inlined_call_operand.hbm [shape: f32[2,4,256], index: 0, kind: input, shape index: {}]   ;;  %s950_s1 = inlined_call_operand.hbm [shape: s32[2,1,256], index: 1, kind: input, shape index: {}]   ;;  %s951_s2 = inlined_call_operand.hbm [shape: f32[1,1], index: 2, kind: output, shape index: {}]  }
   0x1   :  { %9 = vsyncpa [#allocation4 + $0x1], 0 }
   0x2   :  { %10 = vsyncpa [#allocation7], 0 }
   0x3   :  { %12 = vsyncpa [#allocation7 + $0x1], 0 }
   0x4   :  { %13 = vsyncpa [#allocation5], 0  ;;  %s743_s9 = smov 0   ;;  %s745_s10 = smov 0  }
   0x5   :  { %s747_s11 = smov 0   ;;  %s749_s12 = smov 0  }
   0x6   :  { %s751_s13 = smov 0   ;;  %s753_s14 = smov 0  }
   0x7 LB: > { %s468_s15 = sadd.s32 4294967295, %s720_s14   ;;  %s31_s16 = sadd.s32 1, %s716_s13  ;;  %s720_s14 = sphi %s753_s14, %s19_s14   ;;  %s716_s13 = sphi %s751_s13, %s966_s13   ;;  %s712_s12 = sphi %s749_s12, %s965_s12   ;;  %s708_s11 = sphi %s747_s11, %s964_s11   ;;  %s704_s10 = sphi %s745_s10, %s963_s10   ;;  %s700_s9 = sphi %s743_s9, %s962_s9  }
   0x8   : > { %p33_p0 = scmp.ge.s32.totalorder %s31_s16, 2  ;;  %s40_s17 = sadd.s32 1, %s708_s11 }
   0x9   : > { %p47_p1 = scmp.ne.s32.totalorder %s708_s11, %s704_s10  ;;  %p48_p2 = scmp.eq.s32.totalorder %s720_s14, 0 }
   0xa   : > { %s968_s16 = smov (%p33_p0, %s31_s16), 0  ;;  %p53_p4 = scmp.ne.s32.totalorder %s704_s10, %s700_s9 }
   0xb   : > { %p779_p3 = por %p48_p2, %p47_p1  ;;  %s35_s19 = ssub.s32 %s716_s13, %s968_s16 }
   0xc   : > { %p54_p5 = scmp.eq.s32.totalorder %s468_s15, 0  ;;  %p38_p6 = scmp.eq.s32.totalorder %s35_s19, 0 }
   0xd   : > { %p511_p8 = scmp.lt.s32.totalorder %s720_s14, 2  ;;  %s797_s22 = sand.u32 1, %s708_s11  }
   0xe   : > { %p788_p7 = por %p54_p5, %p53_p4  ;;  %s492_s23 = sshll.u32 %s716_s13, 7 }
   0xf   : > { %s794_s21 = scalar_select %p38_p6, %s708_s11, %s40_s17  }
  0x10   : > { %s954_s20 = scalar_select %p788_p7, 1, 0 }
  0x11   : > { %s471_s24 = sshll.u32 %s797_s22, 3  ;;  %s804_s27 = scalar_lea.hbm %s949_s0, %s492_s23 }
  0x12   : > { %s130_s28 = scalar_lea.vmem [#allocation3], %s471_s24  ;;  %p808_p9 = pnand %p511_p8, %p779_p3 }
  0x13   : > { %s140_s29 = sshll.u32 %s130_s28, 4  ;;  %s127_s3 = scalar_lea.sflag [#allocation4], %s797_s22  ;;  %s812_s29 = int_to_ptr.vmem [resolvable:$true] %s140_s29 }
  0x14   : > { %s576_s4 = scalar_lea.hbm %s804_s27, 128  ;;  %p578_p13 = pneg %p808_p9 }
  0x15   : > { %p577_p12 = scmp.ne.s32.totalorder %s804_s27, %s576_s4  ;;  %s581_s7 = scalar_lea.hbm %s949_s0, 256 }
  0x16   : > { %p582_p2 = scmp.lt.u32.totalorder %s804_s27, %s949_s0  ;;  %p583_p3 = scmp.lt.u32.totalorder %s581_s7, %s576_s4 }
  0x17   : > { %p579_p0 = pnand %p578_p13, %p577_p12  ;;  %p585_p5 = scmp.lt.u32.totalorder %s576_s4, %s804_s27 }
  0x18   : > { %p584_p4 = por %p583_p3, %p582_p2 }
  0x19   : > { %p580_p1 = pneg %p579_p0 }
  0x1a   : > { %p586_p6 = por %p585_p5, %p584_p4 }
  0x1c   : > { %p587_p8 = pnand %p586_p6, %p580_p1 }
  0x1e   : > { %590 = shalt.err (!%p587_p8)
}
  0x1f   : > { %s591_s17 = scalar_lea.vmem %s812_s29, 128  ;;  %s722_s18 = smov [#allocation3]  }
  0x20   : > { %p592_p12 = scmp.ne.s32.totalorder %s812_s29, %s591_s17  ;;  %s596_s19 = sshll.u32 %s722_s18, 4  ;;  %s597_s19 = int_to_ptr.vmem [resolvable:$false] %s596_s19 }
  0x21   : > { %s598_s23 = scalar_lea.vmem %s597_s19, 256  ;;  %p599_p11 = scmp.lt.s32.totalorder %s812_s29, %s597_s19 }
  0x22   : > { %p594_p0 = pnand %p592_p12, %p578_p13  ;;  %p600_p2 = scmp.lt.s32.totalorder %s598_s23, %s591_s17 }
  0x24   : > { %p595_p10 = pneg %p594_p0  ;;  %p601_p3 = por %p600_p2, %p599_p11 }
  0x26   : > { %p602_p4 = pnand %p601_p3, %p595_p10 }
  0x28   : > { %605 = shalt.err (!%p602_p4)
}
  0x29   : > { %507 = dma.hbm_to_vmem [thread:$0]  (!%p808_p9), %s804_s27, 128, %s812_s29, %s127_s3  }
  0x2a   : > { %p956_p1 = scmp.lt.s32.totalorder %s720_s14, 3  ;;  %p957_p5 = scmp.ge.s32.totalorder %s720_s14, 1 }
  0x2b   : > { %s474_s25 = sshll.u32 %s797_s22, 1  ;;  %s493_s26 = sshll.u32 %s716_s13, 5 }
  0x2c   : > { %p846_p6 = pnand %p957_p5, %p956_p1  ;;  %s855_s5 = scalar_lea.hbm %s950_s1, %s493_s26 }
  0x2d   : > { %s151_s6 = scalar_lea.vmem [#allocation6], %s474_s25  ;;  %s148_s27 = scalar_lea.sflag [#allocation7], %s797_s22 }
  0x2e   : > { %s958_s24 = scalar_select %p846_p6, 1, 0 }
  0x2f   : > { %s161_s7 = sshll.u32 %s151_s6, 4  ;;  %s606_s29 = scalar_lea.hbm %s855_s5, 32  ;;  %s162_s7 = int_to_ptr.vmem [resolvable:$true] %s161_s7 }
  0x30   : > { %p607_p10 = scmp.ne.s32.totalorder %s855_s5, %s606_s29  ;;  %s611_s9 = scalar_lea.hbm %s950_s1, 64 }
  0x31   : > { %p612_p12 = scmp.lt.u32.totalorder %s855_s5, %s950_s1  ;;  %p613_p0 = scmp.lt.u32.totalorder %s611_s9, %s606_s29 }
  0x32   : > { %p609_p11 = pnand %p607_p10, %p578_p13  ;;  %p615_p3 = scmp.lt.u32.totalorder %s606_s29, %s855_s5 }
  0x33   : > { %p614_p2 = por %p613_p0, %p612_p12 }
  0x34   : > { %p610_p8 = pneg %p609_p11 }
  0x35   : > { %p616_p4 = por %p615_p3, %p614_p2 }
  0x37   : > { %p617_p1 = pnand %p616_p4, %p610_p8 }
  0x39   : > { %620 = shalt.err (!%p617_p1)
}
  0x3a   : > { %s621_s22 = scalar_lea.vmem %s162_s7, 32  ;;  %s723_s19 = smov [#allocation6]  }
  0x3b   : > { %p622_p5 = scmp.ne.s32.totalorder %s162_s7, %s621_s22  ;;  %s626_s23 = sshll.u32 %s723_s19, 4  ;;  %s627_s23 = int_to_ptr.vmem [resolvable:$false] %s626_s23 }
  0x3c   : > { %s628_s25 = scalar_lea.vmem %s627_s23, 64  ;;  %p629_p7 = scmp.lt.s32.totalorder %s162_s7, %s627_s23 }
  0x3d   : > { %p624_p10 = pnand %p622_p5, %p578_p13  ;;  %p630_p6 = scmp.lt.s32.totalorder %s628_s25, %s621_s22 }
  0x3f   : > { %p625_p11 = pneg %p624_p10  ;;  %p631_p0 = por %p630_p6, %p629_p7 }
  0x41   : > { %p632_p12 = pnand %p631_p0, %p625_p11 }
  0x43   : > { %635 = shalt.err (!%p632_p12)
}
  0x44   : > { %510 = dma.hbm_to_vmem [thread:$0]  (!%p808_p9), %s855_s5, 32, %s162_s7, %s148_s27  }
  0x45   : > { %p959_p8 = scmp.ne.s32.totalorder %s958_s24, 0 }
  0x46   : > { %s172_s26 = sand.u32 (!%p959_p8), 1, %s704_s10   ;;  %p960_p13 = scmp.ne.s32.totalorder (!%p959_p8), %s954_s20, 0 }
  0x47   : > { %170 = sbr.rel (%p959_p8) target bundleno = 332 (0x14c), region = 28  ;;  %s478_s28 = sshll.u32 (!%p959_p8), %s172_s26, 3 }
  0x48   : > { %s173_s4 = scalar_lea.sflag (!%p959_p8), [#allocation4], %s172_s26  ;;  %s176_s6 = scalar_lea.vmem (!%p959_p8), [#allocation3], %s478_s28 }
  0x4e   : > { %687 = dma.done.wait (%p960_p13), %s173_s4, 128  }
  0x4f   : > { %689 = vsyncadd (%p960_p13), %s173_s4, 4294967168  ;;  %s479_s29 = sshll.u32 %s172_s26, 1  ;;  %s182_s3 = scalar_lea.sflag [#allocation7], %s172_s26 }
  0x50   : > { %s884_s30 = scalar_lea.vmem [#allocation6], %s479_s29 }
  0x51   : > { %691 = dma.done.wait (%p960_p13), %s182_s3, 32  }
  0x52   : > { %693 = vsyncadd (%p960_p13), %s182_s3, 4294967264  ;;  %p208_p7 = scmp.eq.s32.totalorder %s712_s12, 0  ;;  %p212_p9 = scmp.eq.s32.totalorder %s712_s12, 1 }
  0x53   : > { %v217_v0 = vlaneseq (%p208_p7)  ;;  %v724_v1 = vmov (%p208_p7), 0.0  }
  0x54   : > { %216 = sbr.rel (!%p208_p7) target bundleno = 91 (0x5b), region = 40 }
  0x55   : > { %vm219_vm0 = vcmp.lt.s32.totalorder (%p208_p7), %v217_v0, 256 }
  0x56   : > { %221 = vst.msk [vmem:[#allocation2] sm:$0x3] (%p208_p7), %vm219_vm0, %v724_v1 }
  0x5b PF: > { %v222_v2 = vld [vmem:[%s176_s6] sm:$0xff]  ;;  %v725_v8 = vmov 1966171168   ;;  %v245_v10 = vlaneseq  ;;  %v223_v29 = vld [vmem:[%s884_s30] sm:$0x3]  ;;  %v726_v45 = vmov 286326784  }
  0x5c   : > { %v482_v3 = vrot.slane %v222_v2, 9  ;;  %v483_v4 = vrot.slane %v222_v2, 10  ;;  %v484_v6 = vrot.slane %v222_v2, 11  ;;  %v243_v9 = vunpack.c.l.s4 %v725_v8 }
  0x5d   : > { %v893_v17 = vshrl.u32 %v245_v10, 7  ;;  %vm241_vm1 = vcmp.eq.s32.totalorder %v223_v29, 0  ;;  %vm270_vm2 = vcmp.eq.s32.totalorder %v223_v29, 1  ;;  %vm292_vm3 = vcmp.eq.s32.totalorder %v223_v29, 2  ;;  %v344_v62 = vld [vmem:[#allocation2] sm:$0x3] }
  0x5e   : > { %v228_v5 = vmax.f32 %v222_v2, %v482_v3  ;;  %v244_v16 = vunpack.c.0.s8 %v243_v9  ;;  %v318_v46 = vunpack.c.l.s4 %v726_v45  ;;  %vm307_vm4 = vcmp.eq.s32.totalorder %v223_v29, 3 }
  0x5f   : > { %vm315_vm5 = vcmp.ne.s32.totalorder %v223_v29, 255  ;;  %vm348_vm6 = vcmp.lt.s32.totalorder %v245_v10, 256  ;;  %v361_v3 = vsub.s32 (%p212_p9), 1, %v893_v17  ;;  %vm365_vm7 = vcmask (%p212_p9), 1040384  }
  0x60   : > { %v232_v7 = vmax.f32 %v228_v5, %v483_v4  ;;  %v247_v25 = vsub.s32 %v244_v16, %v893_v17  ;;  %v319_v50 = vunpack.c.0.s8 %v318_v46  ;;  %vm371_vm8 = vcmask (%p212_p9), 0  }
  0x62   : > { %v236_v11 = vmax.f32 %v232_v7, %v484_v6  ;;  %v248_v26 = vrot.slane %v222_v2, %v247_v25  ;;  %v322_v53 = vsub.s32 %v319_v50, %v893_v17 }
  0x64   : > { %v237_v12 = vsub.f32 %v222_v2, %v236_v11  ;;  %v260_v13 = vrot.slane %v236_v11, 7  ;;  %v282_v14 = vrot.slane %v236_v11, 6  ;;  %v297_v15 = vrot.slane %v236_v11, 5 }
  0x65   : > { %v271_v27 = vcombine.high %v248_v26, %v248_v26  ;;  %v255_v32 = vrot.slane %v248_v26, %v247_v25 }
  0x66   : > { %v238_v18 = vmul.f32 1.442695, %v237_v12  ;;  %v262_v19 = vsub.f32 %v222_v2, %v260_v13  ;;  %v284_v20 = vsub.f32 %v222_v2, %v282_v14  ;;  %v299_v21 = vsub.f32 %v222_v2, %v297_v15 }
  0x67   : > { %v278_v34 = vrot.slane %v271_v27, %v247_v25  ;;  %v257_v39 = vsel %vm241_vm1, %v255_v32, 0.0  ;;  %v293_v42 = vcombine.high %v255_v32, %v255_v32  ;;  %v357_v2 = vsub.s32 (%p212_p9), 0, %v893_v17 }
  0x68   : > { %v263_v22 = vmul.f32 1.442695, %v262_v19  ;;  %v285_v23 = vmul.f32 1.442695, %v284_v20  ;;  %v300_v24 = vmul.f32 1.442695, %v299_v21  ;;  %566 = vpow2.f32 %v238_v18 }
  0x69   : > { %v280_v40 = vsel %vm270_vm2, %v278_v34, 0.0  ;;  %v295_v47 = vsel %vm292_vm3, %v293_v42, 0.0  ;;  %v308_v48 = vcombine.high %v278_v34, %v278_v34 }
  0x6a   : > { %568 = vpow2.f32 %v263_v22  ;;  %v281_v44 = vadd.f32 %v280_v40, %v257_v39 }
  0x6b   : > { %570 = vpow2.f32 %v285_v23  ;;  %v310_v51 = vsel %vm307_vm4, %v308_v48, 0.0 }
  0x6c   : > { %572 = vpow2.f32 %v300_v24  ;;  %v296_v49 = vadd.f32 %v295_v47, %v281_v44 }
  0x6e   : > { %v311_v52 = vadd.f32 %v310_v51, %v296_v49 }
  0x70   : > { %v323_v56 = vrot.slane %v311_v52, %v322_v53 }
  0x72   : > { %v567_v28 = vpop.eup %566 }
  0x74   : > { %v569_v30 = vpop.eup %568 }
  0x75   : > { %v571_v31 = vpop.eup %570  ;;  %v485_v33 = vrot.slane %v569_v30, 9 }
  0x76   : > { %v573_v35 = vpop.eup %572  ;;  %v486_v36 = vrot.slane %v571_v31, 10 }
  0x77   : > { %v269_v37 = vadd.f32 %v567_v28, %v485_v33  ;;  %v487_v38 = vrot.slane %v573_v35, 11 }
  0x79   : > { %v291_v41 = vadd.f32 %v486_v36, %v269_v37 }
  0x7b   : > { %v306_v43 = vadd.f32 %v487_v38, %v291_v41 }
  0x7d   : > { %574 = vlog2.f32 %v306_v43 }
  0x87   : > { %v575_v54 = vpop.eup %574 }
  0x88   : > { %v313_v55 = vmul.f32 0.6931472, %v575_v54 }
  0x8a   : > { %v314_v57 = vadd.f32 %v313_v55, %v236_v11 }
  0x8c   : > { %v325_v58 = vsub.f32 %v314_v57, %v323_v56 }
  0x8e   : > { %v326_v59 = vmax.f32 %v325_v58, 0.0 }
  0x90   : > { %v334_v60 = vrot.slane %v326_v59, %v247_v25 }
  0x91   : > { %352 = sbr.rel (!%p212_p9) target bundleno = 307 (0x133), region = 44 }
  0x92   : > { %v341_v61 = vrot.slane %v334_v60, %v247_v25 }
  0x94   : > { %v343_v63 = vsel %vm315_vm5, %v341_v61, 0.0 }
  0x95   : > { %v345_v0 = vadd.f32 %v344_v62, %v343_v63 }
  0x97   : > { %350 = vst.msk [vmem:[#allocation2] sm:$0x3] %vm348_vm6, %v345_v0 }
  0x9e   : > { %v353_v1 = vld [vmem:[#allocation2] sm:$0x3] }
  0x9f   : > { %v358_v4 = vrot.slane %v353_v1, %v357_v2  ;;  %v362_v5 = vrot.slane %v353_v1, %v361_v3 }
  0xa1   : > { %v366_v6 = vsel %vm365_vm7, %v358_v4, 0.0  ;;  %v367_v7 = vsel %vm365_vm7, %v362_v5, 0.0 }
  0xa2   : > { %v368_v8 = vadd.f32 %v367_v7, %v366_v6 }
  0xa4   : > { %369 = vadd.xlane.f32.xlu0 %v368_v8 }
 0x131   : > { %v370_v9 = vpop.xlane.xlu0 %369 }
 0x132   : > { %372 = vst.msk [vmem:[#allocation8] sm:$0x1] %vm371_vm8, %v370_v9 }
 0x133 PF: > { %p905_p6 = scmp.eq.s32.totalorder %s468_s15, 1  ;;  %s727_s20 = smov [#allocation8]  }
 0x134   : > { %s380_s24 = sshll.u32 %s727_s20, 4  ;;  %s381_s24 = int_to_ptr.vmem [resolvable:$true] %s380_s24 }
 0x135   : > { %s636_s5 = scalar_lea.vmem %s381_s24, 16  ;;  %s642_s7 = scalar_lea.vmem %s381_s24, 32 }
 0x136   : > { %p637_p2 = scmp.ne.s32.totalorder %s381_s24, %s636_s5  ;;  %p643_p1 = scmp.lt.s32.totalorder %s381_s24, %s381_s24 }
 0x137   : > { %p644_p5 = scmp.lt.s32.totalorder %s642_s7, %s636_s5 }
 0x138   : > { %p638_p3 = pnand %p637_p2, %p905_p6 }
 0x139   : > { %p645_p10 = por %p644_p5, %p643_p1 }
 0x13a   : > { %p639_p4 = pneg %p638_p3 }
 0x13c   : > { %p646_p11 = pnand %p645_p10, %p639_p4 }
 0x13e   : > { %649 = shalt.err (!%p646_p11)
}
 0x13f   : > { %s650_s8 = scalar_lea.hbm %s951_s2, 16 }
 0x140   : > { %p651_p0 = scmp.ne.s32.totalorder %s951_s2, %s650_s8  ;;  %p656_p13 = scmp.lt.u32.totalorder %s650_s8, %s951_s2 }
 0x142   : > { %p652_p12 = pnand %p651_p0, %p905_p6 }
 0x144   : > { %p653_p8 = pneg %p652_p12 }
 0x146   : > { %p658_p7 = pnand %p656_p13, %p653_p8 }
 0x148   : > { %661 = shalt.err (!%p658_p7)
}
 0x149   : > { %501 = dma.vmem_to_hbm [thread:$0]  (%p905_p6), %s381_s24, 16, %s951_s2, [#allocation5]  }
 0x14a   : > { %695 = dma.done.wait (%p905_p6), [#allocation5], 16  }
 0x14b   : > { %697 = vsyncadd (%p905_p6), [#allocation5], 4294967280 }
 0x14c PF: > { %s19_s14 = sadd.s32 1, %s720_s14   ;;  %s962_s9 = smov %s704_s10 }
 0x14d   : > { %p16_p9 = scmp.ge.s32.totalorder %s19_s14, 4   ;;  %s963_s10 = smov %s708_s11 }
 0x14e   : > { %s964_s11 = smov %s794_s21  ;;  %s965_s12 = smov %s716_s13 }
 0x14f   : > { %s966_s13 = smov %s968_s16  ;;  %18 = sbr.rel (!%p16_p9) target bundleno = 7 (0x7), region = 86 }
 0x156   :  { %393 = vsyncpa [#allocation4], 1 }
 0x157   :  { %395 = vsyncpa [#allocation4 + $0x1], 1 }
 0x158   :  { %396 = vsyncpa [#allocation7], 1 }
 0x159   :  { %398 = vsyncpa [#allocation7 + $0x1], 1 }
 0x15a   :  { %399 = vsyncpa [#allocation5], 1 }
 0x15b   :  { %401 = vsyncpa [#allocation5 + $0x1], 1 }

</bundles_post_ra>
